<compile_context>
chip_gen: v5e
topology: v5e:2x2
jax: 0.10.0
libtpu: 0.0.40
codegen_flags: <defaults>
</compile_context>

<pallas_src>
import functools

import jax
import jax.numpy as jnp
from jax.experimental import pallas as pl
from jax.experimental.pallas import tpu as pltpu


_LANE = 128      # node-count padding unit (lane width)
_ROW_ALIGN = 32  # int8 sublane tile -> row tiles must be multiples of 32


def _vmem_capacity_bytes():
    try:
        return int(pltpu.get_tpu_info().vmem_capacity_bytes)
    except Exception:
        return 64 << 20  # conservative fallback: v7x per-TensorCore VMEM


def _round_up(x, m):
    return (x + m - 1) // m * m


def _pick_row_tile(np_rows, per_row_bytes, resident_bytes, vmem_cap):
    """Largest row tile (multiple of 32 that divides np_rows) whose per-step
    working set fits ~55% of the chip's VMEM; prefers >=2 grid steps so the
    'parallel' axis can shard across both TensorCores on v7x."""
    budget = max(int(vmem_cap * 0.55) - resident_bytes, 4 << 20)
    cands = [t for t in range(np_rows, _ROW_ALIGN - 1, -_ROW_ALIGN)
             if np_rows % t == 0]
    if not cands:
        return np_rows
    tm = cands[-1]
    for t in cands:
        if t * per_row_bytes <= budget:
            tm = t
            break
    if np_rows // tm < 2 and np_rows >= 2 * _LANE:
        for t in cands:  # allow both TensorCores to work on padded graphs
            if t <= np_rows // 2 and t * per_row_bytes <= budget:
                tm = t
                break
    return tm


def _compiler_params(est_vmem_bytes, vmem_cap):
    kw = dict(dimension_semantics=("parallel",))
    # Raise the scoped-VMEM limit only when the per-step working set needs it;
    # the cap is generation-aware (85% of physical VMEM) instead of fixed.
    if est_vmem_bytes > (16 << 20):
        kw["vmem_limit_bytes"] = int(min(vmem_cap * 0.85,
                                         max(2 * est_vmem_bytes, 32 << 20)))
    return pltpu.CompilerParams(**kw)


def _project_kernel(x_ref, w_ref, wh_ref, f12_ref, *, hf):
    """One fused MXU pass: [Wh | f12] = x @ [W_all | W_all @ a_blk]."""
    x = x_ref[...].astype(jnp.bfloat16)
    y = jnp.dot(x, w_ref[...], preferred_element_type=jnp.float32)  # [TM, HF+2H]
    wh_ref[...] = y[:, :hf].astype(wh_ref.dtype)   # bf16: MXU RHS of stage 2
    f12_ref[...] = y[:, hf:]                       # fp32: attention logit terms


def _attention_kernel(adj_ref, f1_ref, f2t_ref, wh_ref, o_ref, *,
                      nheads, fout, alpha, apply_elu, final_log_softmax):
    # adj is a 0/1 int8 edge mask converted once per grid step.  Every row must
    # contain at least one edge (self-loops) because the softmax mask is applied
    # by multiplication instead of a -9e15 compare+select.
    adj = adj_ref[...].astype(jnp.float32)                     # [TM, N]
    cols = []
    # TODO(synk): for many heads / very large tiles, move to lax.fori_loop with
    # a shared VMEM scratch to bound live [TM, N] temporaries per head.
    for h in range(nheads):                                    # static, small unroll
        f1 = f1_ref[:, h:h + 1]                                # [TM, 1] fp32
        f2 = f2t_ref[h:h + 1, :]                               # [1,  N] fp32
        e = f1 + f2                                            # broadcast add (VPU)
        e = jnp.maximum(e, alpha * e)                          # LeakyReLU (alpha < 1)
        m = jnp.max(e, axis=1, keepdims=True)                  # shift (softmax invariant)
        p = jnp.exp(e - m) * adj                               # masked, unnormalized
        # TODO(synk): compute exp in bf16 on v6e/v7x (bf16 EUP) once chip gating is wired.
        s = jnp.sum(p, axis=1, keepdims=True)
        att = (p * pl.reciprocal(s, approx=True)).astype(jnp.bfloat16)
        # TODO(synk): attention dropout (training mode) omitted -- inference semantics.
        wh_h = wh_ref[:, h * fout:(h + 1) * fout]              # [N, F] bf16
        hp = jnp.dot(att, wh_h, preferred_element_type=jnp.float32)   # [TM, F]
        if apply_elu:
            # TODO(synk): use expm1 for tiny-negative precision once exposed by Mosaic.
            hp = jnp.where(hp > 0, hp, jnp.exp(hp) - 1.0)      # ELU(alpha=1)
        cols.append(hp)
    out = cols[0] if nheads == 1 else jnp.concatenate(cols, axis=1)   # [TM, HF]
    if final_log_softmax:
        mx = jnp.max(out, axis=1, keepdims=True)
        lse = jnp.log(jnp.sum(jnp.exp(out - mx), axis=1, keepdims=True)) + mx
        out = out - lse
    # Single lane-dense [TM, HF] store per grid step (no per-head masked stores).
    o_ref[...] = out.astype(o_ref.dtype)


def gat_fused_layer(x_p, adj_i8, W_all, a_blk, *, nheads, alpha,
                    apply_elu, final_log_softmax, out_dtype):
    Np, Fin = x_p.shape
    HF = W_all.shape[1]
    fout = HF // nheads
    assert (not final_log_softmax) or nheads == 1
    vmem_cap = _vmem_capacity_bytes()

    # Host-side fusion of the two stage-1 matmuls: one MXU pass over
    # W_aug = [W_all | W_all @ a_blk] yields Wh and the per-head f1|f2 terms.
    W_aug = jnp.concatenate([W_all, W_all @ a_blk], axis=1).astype(jnp.bfloat16)

    # VMEM-aware row tile (stage 2 dominates the per-step working set).
    xb = jnp.dtype(x_p.dtype).itemsize
    per_row = (2 * Np * 1             # double-buffered int8 adj tile
               + 3 * Np * 4           # fp32 e / p / adj temporaries
               + 12 * HF + 16 * nheads
               + 2 * Fin * xb)        # stage-1 x tile (tm shared by both stages)
    resident = Np * HF * 2 + 2 * nheads * Np * 4 + Fin * (HF + 2 * nheads) * 2
    tm = _pick_row_tile(Np, per_row, resident, vmem_cap)
    grid = (Np // tm,)

    # Stage 1: fused projection + attention-logit terms.
    est1 = (2 * tm * Fin * xb + 2 * Fin * (HF + 2 * nheads) * 2
            + 2 * tm * HF * 2 + 2 * tm * 2 * nheads * 4
            + 2 * tm * (HF + 2 * nheads) * 4)
    wh, f12 = pl.pallas_call(
        functools.partial(_project_kernel, hf=HF),
        out_shape=(jax.ShapeDtypeStruct((Np, HF), jnp.bfloat16),
                   jax.ShapeDtypeStruct((Np, 2 * nheads), jnp.float32)),
        grid=grid,
        in_specs=[pl.BlockSpec((tm, Fin), lambda i: (i, 0)),
                  pl.BlockSpec((Fin, HF + 2 * nheads), lambda i: (0, 0))],
        out_specs=(pl.BlockSpec((tm, HF), lambda i: (i, 0)),
                   pl.BlockSpec((tm, 2 * nheads), lambda i: (i, 0))),
        compiler_params=_compiler_params(est1, vmem_cap),
    )(x_p, W_aug)

    f1 = f12[:, :nheads]                   # [Np, H]  row term (tiled with rows)
    f2t = jnp.transpose(f12[:, nheads:])   # [H, Np]  column term (tiny transpose)

    # Stage 2: masked softmax attention + aggregation, row-tiled over nodes.
    # TODO(synk): for very large N add a neighbor-axis grid with online softmax
    # so Wh/f2t need not stay fully VMEM-resident (matters most on v7x's 64 MiB).
    est2 = resident + tm * per_row
    kernel = functools.partial(
        _attention_kernel, nheads=nheads, fout=fout, alpha=float(alpha),
        apply_elu=apply_elu, final_log_softmax=final_log_softmax)
    return pl.pallas_call(
        kernel,
        out_shape=jax.ShapeDtypeStruct((Np, HF), out_dtype),
        grid=grid,
        in_specs=[pl.BlockSpec((tm, Np), lambda i: (i, 0)),        # adj rows (int8)
                  pl.BlockSpec((tm, nheads), lambda i: (i, 0)),    # f1 rows
                  pl.BlockSpec((nheads, Np), lambda i: (0, 0)),    # f2^T (resident)
                  pl.BlockSpec((Np, HF), lambda i: (0, 0))],       # Wh_all (resident, bf16)
        out_specs=pl.BlockSpec((tm, HF), lambda i: (i, 0)),
        compiler_params=_compiler_params(est2, vmem_cap),
    )(adj_i8, f1, f2t, wh)


def _stack_heads(heads):
    """Pack per-head (W [Fin,F], a [2F,1]) into W_all [Fin,H*F] and a block-diag
    a_blk [H*F, 2H] (column h = a1 of head h, column H+h = a2 of head h)."""
    H = len(heads)
    _, F = heads[0][0].shape
    W_all = jnp.concatenate([W for W, _ in heads], axis=1)
    a_blk = jnp.zeros((H * F, 2 * H), jnp.float32)
    for h, (_, a) in enumerate(heads):
        a_blk = a_blk.at[h * F:(h + 1) * F, h].set(a[:F, 0])
        a_blk = a_blk.at[h * F:(h + 1) * F, H + h].set(a[F:, 0])
    return W_all, a_blk


def gat_forward(x, adjs, params, *, alpha):
    """Matches GAT.forward in eval mode (dropout == identity).

    Requirement: every node has at least one edge (e.g. self-loops) -- the
    softmax mask is applied by multiplying with the 0/1 adjacency."""
    N = x.shape[0]
    Np = _round_up(max(N, _LANE), _LANE)

    # Pad nodes to a lane-aligned count; padded rows get a self-loop so their
    # (discarded) softmax rows stay finite.  adj is streamed as int8 0/1.
    adj_p = jnp.pad(adjs[0].astype(jnp.float32), ((0, Np - N), (0, Np - N)))
    pad_diag = jnp.diag((jnp.arange(Np) >= N).astype(jnp.float32))
    adj_i8 = jnp.maximum(adj_p, pad_diag).astype(jnp.int8)
    x_p = jnp.pad(x, ((0, Np - N), (0, 0)))

    nheads = len(params["heads"])
    # x = dropout(x)  -> identity at inference
    W_all, a_blk = _stack_heads(params["heads"])
    h = gat_fused_layer(x_p, adj_i8, W_all, a_blk, nheads=nheads, alpha=alpha,
                        apply_elu=True, final_log_softmax=False,
                        out_dtype=jnp.bfloat16)        # [Np, nheads*nhid] bf16
    # h = dropout(h)  -> identity at inference
    W_out, a_out = params["out"]
    W_all2, a_blk2 = _stack_heads([(W_out, a_out)])
    out = gat_fused_layer(h, adj_i8, W_all2, a_blk2, nheads=1, alpha=alpha,
                          apply_elu=True, final_log_softmax=True,
                          out_dtype=jnp.float32)       # [Np, nclass]
    return out[:N]


if __name__ == "__main__":
    # Small, deterministic configuration
    N, nfeat, nhid, nclass, nheads = 16, 32, 16, 8, 4
    alpha = 0.2
    dropout = 0.6  # unused at inference

    key = jax.random.PRNGKey(0)
    keys = jax.random.split(key, 4 + 2 * nheads)

    x = jax.random.normal(keys[0], (N, nfeat), dtype=jnp.float32)
    adj_rand = (jax.random.uniform(keys[1], (N, N)) > 0.5).astype(jnp.float32)
    adj = jnp.maximum(adj_rand, jnp.eye(N, dtype=jnp.float32))  # self-loops
    adjs = [adj]
    # Invariant required by the multiplicative softmax mask: every row has an edge.
    assert bool(jnp.all(jnp.sum(adj, axis=1) > 0))

    heads = []
    for hh in range(nheads):
        W_h = jax.random.normal(keys[2 + 2 * hh], (nfeat, nhid), jnp.float32) * 0.1
        a_h = jax.random.normal(keys[3 + 2 * hh], (2 * nhid, 1), jnp.float32) * 0.1
        heads.append((W_h, a_h))
    W_out = jax.random.normal(keys[2 + 2 * nheads], (nhid * nheads, nclass), jnp.float32) * 0.1
    a_out = jax.random.normal(keys[3 + 2 * nheads], (2 * nclass, 1), jnp.float32) * 0.1
    params = {"heads": heads, "out": (W_out, a_out)}

    out = gat_forward(x, adjs, params, alpha=alpha)
    out = jax.block_until_ready(out)

    assert out.shape == (N, nclass), out.shape
    assert bool(jnp.all(jnp.isfinite(out)))
    # rows of log_softmax should exponentiate-sum to ~1
    row_sums = jnp.sum(jnp.exp(out), axis=1)
    assert bool(jnp.all(jnp.abs(row_sums - 1.0) < 1e-4))

    print("KERNEL_OK")
</pallas_src>

<mosaic_0001>
module attributes {stable_mosaic.version = 11 : i64} {
  func.func @_project_kernel(%arg0: i32, %arg1: memref<128x32xf32, #tpu.memory_space<vmem>>, %arg2: memref<32x72xbf16, #tpu.memory_space<vmem>>, %arg3: memref<128x64xbf16, #tpu.memory_space<vmem>>, %arg4: memref<128x8xf32, #tpu.memory_space<vmem>>) attributes {dimension_semantics = [#tpu.dimension_semantics<parallel>], iteration_bounds = array<i64: 1>, scalar_prefetch = 0 : i64, scratch_operands = 0 : i64, tpu.core_type = #tpu.core_type<tc>, window_params = [{transform_indices = @transform_0, window_bounds = array<i64: 128, 32>}, {pipeline_mode = #tpu.pipeline_mode<synchronous>, transform_indices = @transform_1, window_bounds = array<i64: 32, 72>}, {transform_indices = @transform_2, window_bounds = array<i64: 128, 64>}, {transform_indices = @transform_3, window_bounds = array<i64: 128, 8>}]} {
    %c0 = arith.constant 0 : index
    %c0_0 = arith.constant 0 : index
    %0 = vector.load %arg1[%c0, %c0_0] : memref<128x32xf32, #tpu.memory_space<vmem>>, vector<128x32xf32>
    %1 = arith.truncf %0 : vector<128x32xf32> to vector<128x32xbf16>
    %c0_1 = arith.constant 0 : index
    %c0_2 = arith.constant 0 : index
    %2 = vector.load %arg2[%c0_1, %c0_2] : memref<32x72xbf16, #tpu.memory_space<vmem>>, vector<32x72xbf16>
    %cst = arith.constant dense<0.000000e+00> : vector<128x72xf32>
    %3 = tpu.matmul %1, %2, %cst {dimension_numbers = #tpu.dot_dimension_numbers<[1], [0], [0], [1], [0, 0, 1, 1], [], []>} : vector<128x32xbf16>, vector<32x72xbf16>, vector<128x72xf32> -> vector<128x72xf32>
    %4 = vector.extract_strided_slice %3 {offsets = [0, 0], sizes = [128, 64], strides = [1, 1]} : vector<128x72xf32> to vector<128x64xf32>
    %5 = arith.truncf %4 : vector<128x64xf32> to vector<128x64xbf16>
    %c0_3 = arith.constant 0 : index
    %c0_4 = arith.constant 0 : index
    %6 = vector.load %arg3[%c0_3, %c0_4] : memref<128x64xbf16, #tpu.memory_space<vmem>>, vector<128x64xbf16>
    tpu.vector_store %arg3[%c0_3, %c0_4], %5 {strides = array<i32>} : memref<128x64xbf16, #tpu.memory_space<vmem>>, vector<128x64xbf16>,
    %7 = vector.extract_strided_slice %3 {offsets = [0, 64], sizes = [128, 8], strides = [1, 1]} : vector<128x72xf32> to vector<128x8xf32>
    %c0_5 = arith.constant 0 : index
    %c0_6 = arith.constant 0 : index
    %8 = vector.load %arg4[%c0_5, %c0_6] : memref<128x8xf32, #tpu.memory_space<vmem>>, vector<128x8xf32>
    tpu.vector_store %arg4[%c0_5, %c0_6], %7 {strides = array<i32>} : memref<128x8xf32, #tpu.memory_space<vmem>>, vector<128x8xf32>,
    return
  }
  func.func @transform_0(%arg0: i32) -> (i32, i32) {
    %c0_i32 = arith.constant 0 : i32
    %c0_i32_0 = arith.constant 0 : i32
    return %arg0, %c0_i32 : i32, i32
  }
  func.func @transform_1(%arg0: i32) -> (i32, i32) {
    %c0_i32 = arith.constant 0 : i32
    %c0_i32_0 = arith.constant 0 : i32
    %c0_i32_1 = arith.constant 0 : i32
    return %c0_i32, %c0_i32_0 : i32, i32
  }
  func.func @transform_2(%arg0: i32) -> (i32, i32) {
    %c0_i32 = arith.constant 0 : i32
    %c0_i32_0 = arith.constant 0 : i32
    return %arg0, %c0_i32 : i32, i32
  }
  func.func @transform_3(%arg0: i32) -> (i32, i32) {
    %c0_i32 = arith.constant 0 : i32
    %c0_i32_0 = arith.constant 0 : i32
    return %arg0, %c0_i32 : i32, i32
  }
}

</mosaic_0001>

<bundles_post_ra>
// kernel: tpu_custom_call.1
= control target key start
LH: loop header
LB: loop body
LE: loop exit
PB: predicated region body
PF: predicated region fallthrough
CT: control target
= control target key end

     0   :  { %vm54_vm0 = vcmask 261120   ;;  %vm144_vm1 = vcmask 519168   ;;  %s275_s20 = smov 64   ;;  %vm225_vm2 = vcmask 64512   ;;  %s502_s1 = inlined_call_operand.vmem [shape: bf16[32,72], index: 1, kind: input, shape index: {}]   ;;  %s503_s0 = inlined_call_operand.vmem [shape: f32[128,32], index: 0, kind: input, shape index: {}]   ;;  %s504_s2 = inlined_call_operand.vmem [shape: bf16[128,64], index: 2, kind: output, shape index: {0}]   ;;  %s505_s3 = inlined_call_operand.vmem [shape: f32[128,8], index: 3, kind: output, shape index: {1}]  }
   0x1   :  { %v267_v0 = vld [vmem:[%s502_s1 + $0x8] sm:$0xff]  ;;  %v266_v1 = vld [vmem:[%s502_s1] sm:$0xff]  ;;  %v16_v14 = vld [vmem:[%s503_s0 + $0x10] sm:$0xff] }
   0x2   :  { %v14_v2 = vld [vmem:[%s503_s0] sm:$0xff]  ;;  %v15_v3 = vld [vmem:[%s503_s0 + $0x8] sm:$0xff]  ;;  %85 = vmatpush.bf16.msra.mxu0 %v267_v0  ;;  %268 = vmatpush.bf16.msra.mxu1 %v267_v0  ;;  %v17_v15 = vld [vmem:[%s503_s0 + $0x18] sm:$0xff] }
   0x3   :  { %v18_v4 = vld [vmem:[%s503_s0 + $0x20] sm:$0xff]  ;;  %v19_v5 = vld [vmem:[%s503_s0 + $0x28] sm:$0xff]  ;;  %269 = vmatpush.bf16.msra.mxu2 %v267_v0  ;;  %270 = vmatpush.bf16.msra.mxu3 %v267_v0  ;;  %v30_v10 = vpack.c.bf16 %v15_v3, %v14_v2  ;;  %v24_v16 = vld [vmem:[%s503_s0 + $0x50] sm:$0xff]  ;;  %v31_v22 = vpack.c.bf16 %v17_v15, %v16_v14 }
   0x4   :  { %v22_v6 = vld [vmem:[%s503_s0 + $0x40] sm:$0xff]  ;;  %v23_v7 = vld [vmem:[%s503_s0 + $0x48] sm:$0xff]  ;;  %v32_v11 = vpack.c.bf16 %v19_v5, %v18_v4  ;;  %v20_v17 = vld [vmem:[%s503_s0 + $0x30] sm:$0xff] }
   0x5   :  { %v26_v8 = vld [vmem:[%s503_s0 + $0x60] sm:$0xff]  ;;  %v27_v9 = vld [vmem:[%s503_s0 + $0x68] sm:$0xff]  ;;  %v34_v12 = vpack.c.bf16 %v23_v7, %v22_v6  ;;  %v21_v18 = vld [vmem:[%s503_s0 + $0x38] sm:$0xff] }
   0x6   :  { %86 = vmatpush.bf16.msra.mxu0 %v266_v1  ;;  %271 = vmatpush.bf16.msra.mxu1 %v266_v1  ;;  %v36_v13 = vpack.c.bf16 %v27_v9, %v26_v8  ;;  %v25_v19 = vld [vmem:[%s503_s0 + $0x58] sm:$0xff]  ;;  %v28_v20 = vld [vmem:[%s503_s0 + $0x70] sm:$0xff]  ;;  %v33_v23 = vpack.c.bf16 %v21_v18, %v20_v17 }
   0x7   :  { %272 = vmatpush.bf16.msra.mxu2 %v266_v1  ;;  %273 = vmatpush.bf16.msra.mxu3 %v266_v1  ;;  %v29_v21 = vld [vmem:[%s503_s0 + $0x78] sm:$0xff]  ;;  %v35_v24 = vpack.c.bf16 %v25_v19, %v24_v16 }
   0x8   :  { %v37_v25 = vpack.c.bf16 %v29_v21, %v28_v20 }
   0x9   :  { %258 = vmatmul.msk.bf16.vlgmr.msra.gmra.mxu0 %vm54_vm0, %v30_v10  ;;  %260 = vmatmul.msk.bf16.vlgmr.msra.gmra.mxu1 %vm54_vm0, %v32_v11 }
   0xa   :  { %262 = vmatmul.msk.bf16.vlgmr.msra.gmra.mxu2 %vm54_vm0, %v34_v12  ;;  %264 = vmatmul.msk.bf16.vlgmr.msra.gmra.mxu3 %vm54_vm0, %v36_v13 }
  0x19   :  { %259 = vmatmul.msk.bf16.gmra.mxu0 %vm54_vm0, %v31_v22  ;;  %261 = vmatmul.msk.bf16.gmra.mxu1 %vm54_vm0, %v33_v23 }
  0x1a   :  { %263 = vmatmul.msk.bf16.gmra.mxu2 %vm54_vm0, %v35_v24  ;;  %265 = vmatmul.msk.bf16.gmra.mxu3 %vm54_vm0, %v37_v25 }
  0x86   :  { %v88_v26 = vpop.f32.mrf.mxu0  ;;  %v98_v27 = vpop.f32.mrf.mxu1 }
  0x87   :  { %v128_v28 = vpack.c.bf16 %v88_v26, %v88_v26  ;;  %v132_v29 = vpack.c.bf16 %v98_v27, %v98_v27  ;;  %185 = vrot.lane.b32.xlu2 %v98_v27, %s275_s20  ;;  %177 = vrot.lane.b32.xlu0 %v88_v26, %s275_s20 }
  0x89   :  { %145 = vst.msk [vmem:[%s504_s2] sm:$0xf] %vm144_vm1, %v128_v28 }
  0x8a   :  { %149 = vst.msk [vmem:[%s504_s2 + $0x10] sm:$0xf] %vm144_vm1, %v132_v29 }
  0x8d   :  { %v108_v30 = vpop.f32.mrf.mxu2  ;;  %v118_v31 = vpop.f32.mrf.mxu3 }
  0x8e   :  { %v136_v32 = vpack.c.bf16 %v108_v30, %v108_v30  ;;  %v90_v33 = vpop.f32.mrf.mxu0  ;;  %v140_v34 = vpack.c.bf16 %v118_v31, %v118_v31  ;;  %v100_v35 = vpop.f32.mrf.mxu1 }
  0x8f   :  { %v129_v36 = vpack.c.bf16 %v90_v33, %v90_v33  ;;  %193 = vrot.lane.b32.xlu2 %v108_v30, %s275_s20  ;;  %201 = vrot.lane.b32.xlu0 %v118_v31, %s275_s20  ;;  %v133_v37 = vpack.c.bf16 %v100_v35, %v100_v35 }
  0x90   :  { %153 = vst.msk [vmem:[%s504_s2 + $0x20] sm:$0xf] %vm144_vm1, %v136_v32 }
  0x91   :  { %146 = vst.msk [vmem:[%s504_s2 + $0x4] sm:$0xf] %vm144_vm1, %v129_v36 }
  0x92   :  { %157 = vst.msk [vmem:[%s504_s2 + $0x30] sm:$0xf] %vm144_vm1, %v140_v34 }
  0x93   :  { %150 = vst.msk [vmem:[%s504_s2 + $0x14] sm:$0xf] %vm144_vm1, %v133_v37 }
  0x95   :  { %v110_v38 = vpop.f32.mrf.mxu2  ;;  %v120_v39 = vpop.f32.mrf.mxu3 }
  0x96   :  { %v137_v40 = vpack.c.bf16 %v110_v38, %v110_v38  ;;  %v93_v41 = vpop.f32.mrf.mxu0  ;;  %v141_v42 = vpack.c.bf16 %v120_v39, %v120_v39  ;;  %v103_v43 = vpop.f32.mrf.mxu1 }
  0x97   :  { %v130_v44 = vpack.c.bf16 %v93_v41, %v93_v41  ;;  %187 = vrot.lane.b32.xlu2 %v100_v35, %s275_s20  ;;  %179 = vrot.lane.b32.xlu0 %v90_v33, %s275_s20  ;;  %v134_v45 = vpack.c.bf16 %v103_v43, %v103_v43 }
  0x98   :  { %154 = vst.msk [vmem:[%s504_s2 + $0x24] sm:$0xf] %vm144_vm1, %v137_v40  ;;  %181 = vrot.lane.b32.xlu1 %v93_v41, %s275_s20 }
  0x99   :  { %147 = vst.msk [vmem:[%s504_s2 + $0x8] sm:$0xf] %vm144_vm1, %v130_v44 }
  0x9a   :  { %158 = vst.msk [vmem:[%s504_s2 + $0x34] sm:$0xf] %vm144_vm1, %v141_v42 }
  0x9b   :  { %151 = vst.msk [vmem:[%s504_s2 + $0x18] sm:$0xf] %vm144_vm1, %v134_v45 }
  0x9d   :  { %v113_v46 = vpop.f32.mrf.mxu2  ;;  %v123_v47 = vpop.f32.mrf.mxu3 }
  0x9e   :  { %v138_v48 = vpack.c.bf16 %v113_v46, %v113_v46  ;;  %v95_v49 = vpop.f32.mrf.mxu0  ;;  %v105_v50 = vpop.f32.mrf.mxu1  ;;  %v142_v53 = vpack.c.bf16 %v123_v47, %v123_v47 }
  0x9f   :  { %v131_v51 = vpack.c.bf16 %v95_v49, %v95_v49  ;;  %195 = vrot.lane.b32.xlu0 %v110_v38, %s275_s20  ;;  %v135_v52 = vpack.c.bf16 %v105_v50, %v105_v50 }
  0xa0   :  { %155 = vst.msk [vmem:[%s504_s2 + $0x28] sm:$0xf] %vm144_vm1, %v138_v48  ;;  %197 = vrot.lane.b32.xlu1 %v113_v46, %s275_s20 }
  0xa1   :  { %148 = vst.msk [vmem:[%s504_s2 + $0xc] sm:$0xf] %vm144_vm1, %v131_v51 }
  0xa2   :  { %152 = vst.msk [vmem:[%s504_s2 + $0x1c] sm:$0xf] %vm144_vm1, %v135_v52 }
  0xa3   :  { %159 = vst.msk [vmem:[%s504_s2 + $0x38] sm:$0xf] %vm144_vm1, %v142_v53 }
  0xa5   :  { %v115_v54 = vpop.f32.mrf.mxu2  ;;  %v125_v55 = vpop.f32.mrf.mxu3 }
  0xa6   :  { %v139_v56 = vpack.c.bf16 %v115_v54, %v115_v54  ;;  %199 = vrot.lane.b32.xlu2 %v115_v54, %s275_s20  ;;  %v143_v57 = vpack.c.bf16 %v125_v55, %v125_v55 }
  0xa7   :  { %189 = vrot.lane.b32.xlu0 %v103_v43, %s275_s20 }
  0xa8   :  { %156 = vst.msk [vmem:[%s504_s2 + $0x2c] sm:$0xf] %vm144_vm1, %v139_v56  ;;  %183 = vrot.lane.b32.xlu1 %v95_v49, %s275_s20 }
  0xa9   :  { %160 = vst.msk [vmem:[%s504_s2 + $0x3c] sm:$0xf] %vm144_vm1, %v143_v57 }
  0xae   :  { %205 = vrot.lane.b32.xlu2 %v123_v47, %s275_s20 }
  0xaf   :  { %207 = vrot.lane.b32.xlu0 %v125_v55, %s275_s20 }
  0xb0   :  { %191 = vrot.lane.b32.xlu1 %v105_v50, %s275_s20 }
  0xb8   :  { %203 = vrot.lane.b32.xlu1 %v120_v39, %s275_s20 }
  0xe1   :  { %v186_v58 = vpop.permute.xlu2 %185 }
  0xe2   :  { %230 = vst.msk [vmem:[%s505_s3 + $0x20] sm:$0xff] %vm225_vm2, %v186_v58 }
  0xe9   :  { %v194_v59 = vpop.permute.xlu2 %193 }
  0xea   :  { %234 = vst.msk [vmem:[%s505_s3 + $0x40] sm:$0xff] %vm225_vm2, %v194_v59 }
  0xf1   :  { %v188_v60 = vpop.permute.xlu2 %187 }
  0xf2   :  { %231 = vst.msk [vmem:[%s505_s3 + $0x28] sm:$0xff] %vm225_vm2, %v188_v60 }
  0xf9   :  { %v178_v61 = vpop.permute.xlu0 %177 }
  0xfa   :  { %226 = vst.msk [vmem:[%s505_s3] sm:$0xff] %vm225_vm2, %v178_v61 }
 0x100   :  { %v200_v62 = vpop.permute.xlu2 %199 }
 0x101   :  { %237 = vst.msk [vmem:[%s505_s3 + $0x58] sm:$0xff] %vm225_vm2, %v200_v62  ;;  %v202_v63 = vpop.permute.xlu0 %201 }
 0x102   :  { %238 = vst.msk [vmem:[%s505_s3 + $0x60] sm:$0xff] %vm225_vm2, %v202_v63 }
 0x108   :  { %v206_v0 = vpop.permute.xlu2 %205 }
 0x109   :  { %240 = vst.msk [vmem:[%s505_s3 + $0x70] sm:$0xff] %vm225_vm2, %v206_v0  ;;  %v180_v1 = vpop.permute.xlu0 %179 }
 0x10a   :  { %227 = vst.msk [vmem:[%s505_s3 + $0x8] sm:$0xff] %vm225_vm2, %v180_v1  ;;  %v182_v2 = vpop.permute.xlu1 %181 }
 0x10b   :  { %228 = vst.msk [vmem:[%s505_s3 + $0x10] sm:$0xff] %vm225_vm2, %v182_v2 }
 0x111   :  { %v196_v3 = vpop.permute.xlu0 %195 }
 0x112   :  { %235 = vst.msk [vmem:[%s505_s3 + $0x48] sm:$0xff] %vm225_vm2, %v196_v3  ;;  %v198_v4 = vpop.permute.xlu1 %197 }
 0x113   :  { %236 = vst.msk [vmem:[%s505_s3 + $0x50] sm:$0xff] %vm225_vm2, %v198_v4 }
 0x119   :  { %v190_v5 = vpop.permute.xlu0 %189 }
 0x11a   :  { %232 = vst.msk [vmem:[%s505_s3 + $0x30] sm:$0xff] %vm225_vm2, %v190_v5  ;;  %v184_v6 = vpop.permute.xlu1 %183 }
 0x11b   :  { %229 = vst.msk [vmem:[%s505_s3 + $0x18] sm:$0xff] %vm225_vm2, %v184_v6 }
 0x121   :  { %v208_v7 = vpop.permute.xlu0 %207 }
 0x122   :  { %241 = vst.msk [vmem:[%s505_s3 + $0x78] sm:$0xff] %vm225_vm2, %v208_v7  ;;  %v192_v8 = vpop.permute.xlu1 %191 }
 0x123   :  { %233 = vst.msk [vmem:[%s505_s3 + $0x38] sm:$0xff] %vm225_vm2, %v192_v8 }
 0x12a   :  { %v204_v9 = vpop.permute.xlu1 %203 }
 0x12b   :  { %239 = vst.msk [vmem:[%s505_s3 + $0x68] sm:$0xff] %vm225_vm2, %v204_v9 }

</bundles_post_ra>
